<compile_context>
chip_gen: v7x
topology: tpu7x:2x2x1
jax: 0.10.0
libtpu: 0.0.40
codegen_flags: <defaults>
</compile_context>

<pallas_src>
import functools

import jax
import jax.numpy as jnp
from jax.experimental import pallas as pl
from jax.experimental.pallas import tpu as pltpu


def user_encoder_kernel(x_ref, wqkv_ref, bqkv_ref, gamma_ref, beta_ref,
                        wa_ref, ba_ref, qvec_ref, out_ref, *, num_heads):
    Bt, S, D = x_ref.shape
    dk = D // num_heads
    scale = 1.0 / jnp.sqrt(jnp.float32(dk))

    # ---- fused Q/K/V projection over the whole (Bt*S, D) slab ---------------
    x2 = x_ref[...].reshape(Bt * S, D)                                  # bf16
    qkv = jnp.dot(x2, wqkv_ref[...],
                  preferred_element_type=jnp.float32) + bqkv_ref[...]   # (Bt*S, 3D) f32
    qkv_b = qkv.astype(jnp.bfloat16)

    # ---- multi-head scaled dot-product attention -----------------------------
    head_outs = []
    for h in range(num_heads):                                # small static unroll
        qh = qkv_b[:, h * dk:(h + 1) * dk].reshape(Bt, S, dk)
        kh = qkv_b[:, D + h * dk:D + (h + 1) * dk].reshape(Bt, S, dk)
        vh = qkv_b[:, 2 * D + h * dk:2 * D + (h + 1) * dk].reshape(Bt, S, dk)
        s = jnp.einsum("bqd,bkd->bqk", qh, kh,
                       preferred_element_type=jnp.float32) * scale      # (Bt, S, S)
        s = s - jnp.max(s, axis=-1, keepdims=True)
        p = jnp.exp(s)
        p = p * pl.reciprocal(jnp.sum(p, axis=-1, keepdims=True), approx=True)
        head_outs.append(jnp.einsum("bqk,bkd->bqd", p.astype(jnp.bfloat16), vh,
                                    preferred_element_type=jnp.float32))
    attn = jnp.concatenate(head_outs, axis=-1)                          # (Bt, S, D) f32

    # ---- LayerNorm (fused stats), eps=1e-5 -----------------------------------
    mu = jnp.mean(attn, axis=-1, keepdims=True)
    msq = jnp.mean(attn * attn, axis=-1, keepdims=True)
    var = msq - mu * mu
    y = (attn - mu) * jax.lax.rsqrt(var + 1e-5)
    y = y * gamma_ref[...] + beta_ref[...]                              # (Bt, S, D)

    # ---- dropout: F.dropout(p=0.2, training=False) is identity at inference --

    # ---- additive attention ---------------------------------------------------
    t = jnp.tanh(jnp.dot(y.reshape(Bt * S, D).astype(jnp.bfloat16), wa_ref[...],
                         preferred_element_type=jnp.float32) + ba_ref[...])  # (Bt*S, Q)
    sc = jnp.sum(t * qvec_ref[...], axis=-1, keepdims=True)             # (Bt*S, 1)
    sc = sc.reshape(Bt, S, 1)
    sc = sc - jnp.max(sc, axis=1, keepdims=True)
    w = jnp.exp(sc)
    w = w * pl.reciprocal(jnp.sum(w, axis=1, keepdims=True), approx=True)  # (Bt, S, 1)

    # single lane-dense slab store per grid step
    out_ref[...] = jnp.sum(w * y, axis=1).astype(out_ref.dtype)         # (Bt, D)


def _pick_batch_tile(B, S):
    """Pick Bt so Bt*S ~ 256 rows per grid step (fills the MXU M dim on v6e/v7x)."""
    target = max(1, 256 // max(S, 1))
    if B <= target:
        return B
    for bt in range(min(target, B - 1), 0, -1):
        # Bt must be 8-aligned (sublane dim of the (Bt, D) output block) and divide B.
        if B % bt == 0 and bt % 8 == 0:
            return bt
    return B  # fallback: whole batch in a single grid step


def user_encoder_forward(x, params, num_heads):
    B, S, D = x.shape
    Q = params["wa"].shape[1]
    Bt = _pick_batch_tile(B, S)
    grid = (B // Bt,)

    # Fuse QKV weights/biases; cast MXU operands to bf16 (f32 accumulation in-kernel).
    wqkv = jnp.concatenate([params["wq"], params["wk"], params["wv"]],
                           axis=1).astype(jnp.bfloat16)                 # (D, 3D)
    bqkv = jnp.concatenate([params["bq"], params["bk"], params["bv"]],
                           axis=1).astype(jnp.float32)                  # (1, 3D)
    wa = params["wa"].astype(jnp.bfloat16)                              # (D, Q)
    qvec = params["qvec"].reshape(1, Q).astype(jnp.float32)             # (1, Q)
    x_b = x.astype(jnp.bfloat16)

    kernel = functools.partial(user_encoder_kernel, num_heads=num_heads)
    const2 = lambda i: (0, 0)

    return pl.pallas_call(
        kernel,
        out_shape=jax.ShapeDtypeStruct((B, D), jnp.float32),
        grid_spec=pltpu.PrefetchScalarGridSpec(
            num_scalar_prefetch=0,
            grid=grid,
            in_specs=[
                pl.BlockSpec((Bt, S, D), lambda i: (i, 0, 0)),   # x tile (pipelined)
                pl.BlockSpec((D, 3 * D), const2),                # fused Wqkv (resident)
                pl.BlockSpec((1, 3 * D), const2),                # fused bias
                pl.BlockSpec((1, D), const2),                    # gamma
                pl.BlockSpec((1, D), const2),                    # beta
                pl.BlockSpec((D, Q), const2),                    # Wa
                pl.BlockSpec((1, Q), const2),                    # ba
                pl.BlockSpec((1, Q), const2),                    # query vector
            ],
            out_specs=pl.BlockSpec((Bt, D), lambda i: (i, 0)),
        ),
        compiler_params=pltpu.CompilerParams(
            dimension_semantics=("parallel",)),                  # shards batch over v7x's 2 TCs
    )(x_b, wqkv, bqkv, params["gamma"], params["beta"], wa, params["ba"], qvec)


def user_encoder_reference(x, params, num_heads):
    """Pure-JAX f32 reference mirroring the PyTorch forward (eval mode)."""
    B, S, D = x.shape
    dk = D // num_heads
    q = x @ params["wq"] + params["bq"]
    k = x @ params["wk"] + params["bk"]
    v = x @ params["wv"] + params["bv"]
    qh = q.reshape(B, S, num_heads, dk).transpose(0, 2, 1, 3)
    kh = k.reshape(B, S, num_heads, dk).transpose(0, 2, 1, 3)
    vh = v.reshape(B, S, num_heads, dk).transpose(0, 2, 1, 3)
    s = jnp.einsum("bhqd,bhkd->bhqk", qh, kh) / jnp.sqrt(jnp.float32(dk))
    p = jax.nn.softmax(s, axis=-1)
    attn = jnp.einsum("bhqk,bhkd->bhqd", p, vh).transpose(0, 2, 1, 3).reshape(B, S, D)
    mu = jnp.mean(attn, axis=-1, keepdims=True)
    var = jnp.mean((attn - mu) ** 2, axis=-1, keepdims=True)
    y = (attn - mu) * jax.lax.rsqrt(var + 1e-5) * params["gamma"] + params["beta"]
    t = jnp.tanh(y @ params["wa"] + params["ba"])
    sc = jnp.squeeze(t @ params["qvec"], axis=-1)
    w = jax.nn.softmax(sc, axis=1)
    return jnp.einsum("bs,bsd->bd", w, y)


def init_params(key, multi_dim, query_vector_dim):
    ks = jax.random.split(key, 8)
    scale = 0.05
    return {
        # nn.Linear weights stored pre-transposed as (in, out)
        "wq": scale * jax.random.normal(ks[0], (multi_dim, multi_dim), jnp.float32),
        "bq": scale * jax.random.normal(ks[1], (1, multi_dim), jnp.float32),
        "wk": scale * jax.random.normal(ks[2], (multi_dim, multi_dim), jnp.float32),
        "bk": scale * jax.random.normal(ks[3], (1, multi_dim), jnp.float32),
        "wv": scale * jax.random.normal(ks[4], (multi_dim, multi_dim), jnp.float32),
        "bv": scale * jax.random.normal(ks[5], (1, multi_dim), jnp.float32),
        "gamma": jnp.ones((1, multi_dim), jnp.float32),
        "beta": jnp.zeros((1, multi_dim), jnp.float32),
        "wa": scale * jax.random.normal(ks[6], (multi_dim, query_vector_dim), jnp.float32),
        "ba": jnp.zeros((1, query_vector_dim), jnp.float32),
        "qvec": scale * jax.random.normal(ks[7], (query_vector_dim, 1), jnp.float32),
    }


if __name__ == "__main__":
    # Small shapes consistent with the module:
    #   attention_dim=16, attention_heads=4 -> multi_dim = 64
    #   query_vector_dim=32, batch=2, num_clicked_news (seq) = 8
    attention_dim = 16
    attention_heads = 4
    multi_dim = attention_dim * attention_heads
    query_vector_dim = 32
    B, S = 2, 8

    key = jax.random.PRNGKey(0)
    k_x, k_p = jax.random.split(key)
    x = jax.random.normal(k_x, (B, S, multi_dim), jnp.float32)
    params = init_params(k_p, multi_dim, query_vector_dim)

    out = user_encoder_forward(x, params, attention_heads)
    out = jax.block_until_ready(out)

    ref = user_encoder_reference(x, params, attention_heads)
    assert out.shape == (B, multi_dim)
    # bf16 MXU inputs (f32 accumulation) -> looser tolerance vs f32 reference
    assert jnp.allclose(out, ref, rtol=5e-2, atol=5e-2), "mismatch vs JAX reference"

    print("KERNEL_OK")
</pallas_src>

<mosaic_0001>
module attributes {stable_mosaic.version = 11 : i64} {
  func.func @user_encoder_kernel(%arg0: i32, %arg1: memref<2x8x64xbf16, #tpu.memory_space<vmem>>, %arg2: memref<64x192xbf16, #tpu.memory_space<vmem>>, %arg3: memref<1x192xf32, #tpu.memory_space<vmem>>, %arg4: memref<1x64xf32, #tpu.memory_space<vmem>>, %arg5: memref<1x64xf32, #tpu.memory_space<vmem>>, %arg6: memref<64x32xbf16, #tpu.memory_space<vmem>>, %arg7: memref<1x32xf32, #tpu.memory_space<vmem>>, %arg8: memref<1x32xf32, #tpu.memory_space<vmem>>, %arg9: memref<2x64xf32, #tpu.memory_space<vmem>>) attributes {dimension_semantics = [#tpu.dimension_semantics<parallel>], iteration_bounds = array<i64: 1>, scalar_prefetch = 0 : i64, scratch_operands = 0 : i64, tpu.core_type = #tpu.core_type<tc>, window_params = [{transform_indices = @transform_0, window_bounds = array<i64: 2, 8, 64>}, {pipeline_mode = #tpu.pipeline_mode<synchronous>, transform_indices = @transform_1, window_bounds = array<i64: 64, 192>}, {pipeline_mode = #tpu.pipeline_mode<synchronous>, transform_indices = @transform_2, window_bounds = array<i64: 1, 192>}, {pipeline_mode = #tpu.pipeline_mode<synchronous>, transform_indices = @transform_3, window_bounds = array<i64: 1, 64>}, {pipeline_mode = #tpu.pipeline_mode<synchronous>, transform_indices = @transform_4, window_bounds = array<i64: 1, 64>}, {pipeline_mode = #tpu.pipeline_mode<synchronous>, transform_indices = @transform_5, window_bounds = array<i64: 64, 32>}, {pipeline_mode = #tpu.pipeline_mode<synchronous>, transform_indices = @transform_6, window_bounds = array<i64: 1, 32>}, {pipeline_mode = #tpu.pipeline_mode<synchronous>, transform_indices = @transform_7, window_bounds = array<i64: 1, 32>}, {transform_indices = @transform_8, window_bounds = array<i64: 2, 64>}]} {
    %cst = arith.constant 1.600000e+01 : f32
    %0 = math.sqrt %cst : f32
    %cst_0 = arith.constant 1.000000e+00 : f32
    %1 = arith.divf %cst_0, %0 : f32
    %c0 = arith.constant 0 : index
    %c0_1 = arith.constant 0 : index
    %c0_2 = arith.constant 0 : index
    %2 = vector.load %arg1[%c0, %c0_1, %c0_2] : memref<2x8x64xbf16, #tpu.memory_space<vmem>>, vector<2x8x64xbf16>
    %3 = vector.shape_cast %2 : vector<2x8x64xbf16> to vector<16x64xbf16>
    %c0_3 = arith.constant 0 : index
    %c0_4 = arith.constant 0 : index
    %4 = vector.load %arg2[%c0_3, %c0_4] : memref<64x192xbf16, #tpu.memory_space<vmem>>, vector<64x192xbf16>
    %cst_5 = arith.constant dense<0.000000e+00> : vector<16x192xf32>
    %5 = tpu.matmul %3, %4, %cst_5 {dimension_numbers = #tpu.dot_dimension_numbers<[1], [0], [0], [1], [0, 0, 1, 1], [], []>} : vector<16x64xbf16>, vector<64x192xbf16>, vector<16x192xf32> -> vector<16x192xf32>
    %c0_6 = arith.constant 0 : index
    %c0_7 = arith.constant 0 : index
    %6 = vector.load %arg3[%c0_6, %c0_7] : memref<1x192xf32, #tpu.memory_space<vmem>>, vector<1x192xf32>
    %7 = vector.broadcast %6 : vector<1x192xf32> to vector<16x192xf32>
    %8 = arith.addf %5, %7 : vector<16x192xf32>
    %9 = arith.truncf %8 : vector<16x192xf32> to vector<16x192xbf16>
    %10 = vector.extract_strided_slice %9 {offsets = [0, 0], sizes = [16, 16], strides = [1, 1]} : vector<16x192xbf16> to vector<16x16xbf16>
    %11 = vector.shape_cast %10 : vector<16x16xbf16> to vector<2x8x16xbf16>
    %12 = vector.extract_strided_slice %9 {offsets = [0, 64], sizes = [16, 16], strides = [1, 1]} : vector<16x192xbf16> to vector<16x16xbf16>
    %13 = vector.shape_cast %12 : vector<16x16xbf16> to vector<2x8x16xbf16>
    %14 = vector.extract_strided_slice %9 {offsets = [0, 128], sizes = [16, 16], strides = [1, 1]} : vector<16x192xbf16> to vector<16x16xbf16>
    %15 = vector.shape_cast %14 : vector<16x16xbf16> to vector<2x8x16xbf16>
    "tpu.trace_start"() <{level = 10 : i32, message = "bqd,bkd->bqk"}> : () -> ()
    %cst_8 = arith.constant dense<0.000000e+00> : vector<2x8x8xf32>
    %16 = tpu.matmul %11, %13, %cst_8 {dimension_numbers = #tpu.dot_dimension_numbers<[2], [2], [1], [1], [0, 0, 0, 1, 1, 1], [0], [0]>} : vector<2x8x16xbf16>, vector<2x8x16xbf16>, vector<2x8x8xf32> -> vector<2x8x8xf32>
    "tpu.trace_stop"() : () -> ()
    %17 = vector.broadcast %1 : f32 to vector<2x8x8xf32>
    %18 = arith.mulf %16, %17 : vector<2x8x8xf32>
    %cst_9 = arith.constant dense<0xFF800000> : vector<2x8xf32>
    %19 = vector.multi_reduction <maximumf>, %18, %cst_9 [2] : vector<2x8x8xf32> to vector<2x8xf32>
    %20 = vector.shape_cast %19 : vector<2x8xf32> to vector<2x8x1xf32>
    %21 = vector.broadcast %20 : vector<2x8x1xf32> to vector<2x8x8xf32>
    %22 = arith.subf %18, %21 : vector<2x8x8xf32>
    %23 = math.exp %22 : vector<2x8x8xf32>
    %cst_10 = arith.constant dense<0.000000e+00> : vector<2x8xf32>
    %24 = vector.multi_reduction <add>, %23, %cst_10 [2] : vector<2x8x8xf32> to vector<2x8xf32>
    %25 = vector.shape_cast %24 : vector<2x8xf32> to vector<2x8x1xf32>
    %26 = tpu.reciprocal %25 {approx = true} : vector<2x8x1xf32> -> vector<2x8x1xf32>
    %27 = vector.broadcast %26 : vector<2x8x1xf32> to vector<2x8x8xf32>
    %28 = arith.mulf %23, %27 : vector<2x8x8xf32>
    %29 = arith.truncf %28 : vector<2x8x8xf32> to vector<2x8x8xbf16>
    "tpu.trace_start"() <{level = 10 : i32, message = "bqk,bkd->bqd"}> : () -> ()
    %cst_11 = arith.constant dense<0.000000e+00> : vector<2x8x16xf32>
    %30 = tpu.matmul %29, %15, %cst_11 {dimension_numbers = #tpu.dot_dimension_numbers<[2], [1], [1], [2], [0, 0, 0, 1, 1, 2], [0], [0]>} : vector<2x8x8xbf16>, vector<2x8x16xbf16>, vector<2x8x16xf32> -> vector<2x8x16xf32>
    "tpu.trace_stop"() : () -> ()
    %31 = vector.extract_strided_slice %9 {offsets = [0, 16], sizes = [16, 16], strides = [1, 1]} : vector<16x192xbf16> to vector<16x16xbf16>
    %32 = vector.shape_cast %31 : vector<16x16xbf16> to vector<2x8x16xbf16>
    %33 = vector.extract_strided_slice %9 {offsets = [0, 80], sizes = [16, 16], strides = [1, 1]} : vector<16x192xbf16> to vector<16x16xbf16>
    %34 = vector.shape_cast %33 : vector<16x16xbf16> to vector<2x8x16xbf16>
    %35 = vector.extract_strided_slice %9 {offsets = [0, 144], sizes = [16, 16], strides = [1, 1]} : vector<16x192xbf16> to vector<16x16xbf16>
    %36 = vector.shape_cast %35 : vector<16x16xbf16> to vector<2x8x16xbf16>
    "tpu.trace_start"() <{level = 10 : i32, message = "bqd,bkd->bqk"}> : () -> ()
    %cst_12 = arith.constant dense<0.000000e+00> : vector<2x8x8xf32>
    %37 = tpu.matmul %32, %34, %cst_12 {dimension_numbers = #tpu.dot_dimension_numbers<[2], [2], [1], [1], [0, 0, 0, 1, 1, 1], [0], [0]>} : vector<2x8x16xbf16>, vector<2x8x16xbf16>, vector<2x8x8xf32> -> vector<2x8x8xf32>
    "tpu.trace_stop"() : () -> ()
    %38 = vector.broadcast %1 : f32 to vector<2x8x8xf32>
    %39 = arith.mulf %37, %38 : vector<2x8x8xf32>
    %cst_13 = arith.constant dense<0xFF800000> : vector<2x8xf32>
    %40 = vector.multi_reduction <maximumf>, %39, %cst_13 [2] : vector<2x8x8xf32> to vector<2x8xf32>
    %41 = vector.shape_cast %40 : vector<2x8xf32> to vector<2x8x1xf32>
    %42 = vector.broadcast %41 : vector<2x8x1xf32> to vector<2x8x8xf32>
    %43 = arith.subf %39, %42 : vector<2x8x8xf32>
    %44 = math.exp %43 : vector<2x8x8xf32>
    %cst_14 = arith.constant dense<0.000000e+00> : vector<2x8xf32>
    %45 = vector.multi_reduction <add>, %44, %cst_14 [2] : vector<2x8x8xf32> to vector<2x8xf32>
    %46 = vector.shape_cast %45 : vector<2x8xf32> to vector<2x8x1xf32>
    %47 = tpu.reciprocal %46 {approx = true} : vector<2x8x1xf32> -> vector<2x8x1xf32>
    %48 = vector.broadcast %47 : vector<2x8x1xf32> to vector<2x8x8xf32>
    %49 = arith.mulf %44, %48 : vector<2x8x8xf32>
    %50 = arith.truncf %49 : vector<2x8x8xf32> to vector<2x8x8xbf16>
    "tpu.trace_start"() <{level = 10 : i32, message = "bqk,bkd->bqd"}> : () -> ()
    %cst_15 = arith.constant dense<0.000000e+00> : vector<2x8x16xf32>
    %51 = tpu.matmul %50, %36, %cst_15 {dimension_numbers = #tpu.dot_dimension_numbers<[2], [1], [1], [2], [0, 0, 0, 1, 1, 2], [0], [0]>} : vector<2x8x8xbf16>, vector<2x8x16xbf16>, vector<2x8x16xf32> -> vector<2x8x16xf32>
    "tpu.trace_stop"() : () -> ()
    %52 = vector.extract_strided_slice %9 {offsets = [0, 32], sizes = [16, 16], strides = [1, 1]} : vector<16x192xbf16> to vector<16x16xbf16>
    %53 = vector.shape_cast %52 : vector<16x16xbf16> to vector<2x8x16xbf16>
    %54 = vector.extract_strided_slice %9 {offsets = [0, 96], sizes = [16, 16], strides = [1, 1]} : vector<16x192xbf16> to vector<16x16xbf16>
    %55 = vector.shape_cast %54 : vector<16x16xbf16> to vector<2x8x16xbf16>
    %56 = vector.extract_strided_slice %9 {offsets = [0, 160], sizes = [16, 16], strides = [1, 1]} : vector<16x192xbf16> to vector<16x16xbf16>
    %57 = vector.shape_cast %56 : vector<16x16xbf16> to vector<2x8x16xbf16>
    "tpu.trace_start"() <{level = 10 : i32, message = "bqd,bkd->bqk"}> : () -> ()
    %cst_16 = arith.constant dense<0.000000e+00> : vector<2x8x8xf32>
    %58 = tpu.matmul %53, %55, %cst_16 {dimension_numbers = #tpu.dot_dimension_numbers<[2], [2], [1], [1], [0, 0, 0, 1, 1, 1], [0], [0]>} : vector<2x8x16xbf16>, vector<2x8x16xbf16>, vector<2x8x8xf32> -> vector<2x8x8xf32>
    "tpu.trace_stop"() : () -> ()
    %59 = vector.broadcast %1 : f32 to vector<2x8x8xf32>
    %60 = arith.mulf %58, %59 : vector<2x8x8xf32>
    %cst_17 = arith.constant dense<0xFF800000> : vector<2x8xf32>
    %61 = vector.multi_reduction <maximumf>, %60, %cst_17 [2] : vector<2x8x8xf32> to vector<2x8xf32>
    %62 = vector.shape_cast %61 : vector<2x8xf32> to vector<2x8x1xf32>
    %63 = vector.broadcast %62 : vector<2x8x1xf32> to vector<2x8x8xf32>
    %64 = arith.subf %60, %63 : vector<2x8x8xf32>
    %65 = math.exp %64 : vector<2x8x8xf32>
    %cst_18 = arith.constant dense<0.000000e+00> : vector<2x8xf32>
    %66 = vector.multi_reduction <add>, %65, %cst_18 [2] : vector<2x8x8xf32> to vector<2x8xf32>
    %67 = vector.shape_cast %66 : vector<2x8xf32> to vector<2x8x1xf32>
    %68 = tpu.reciprocal %67 {approx = true} : vector<2x8x1xf32> -> vector<2x8x1xf32>
    %69 = vector.broadcast %68 : vector<2x8x1xf32> to vector<2x8x8xf32>
    %70 = arith.mulf %65, %69 : vector<2x8x8xf32>
    %71 = arith.truncf %70 : vector<2x8x8xf32> to vector<2x8x8xbf16>
    "tpu.trace_start"() <{level = 10 : i32, message = "bqk,bkd->bqd"}> : () -> ()
    %cst_19 = arith.constant dense<0.000000e+00> : vector<2x8x16xf32>
    %72 = tpu.matmul %71, %57, %cst_19 {dimension_numbers = #tpu.dot_dimension_numbers<[2], [1], [1], [2], [0, 0, 0, 1, 1, 2], [0], [0]>} : vector<2x8x8xbf16>, vector<2x8x16xbf16>, vector<2x8x16xf32> -> vector<2x8x16xf32>
    "tpu.trace_stop"() : () -> ()
    %73 = vector.extract_strided_slice %9 {offsets = [0, 48], sizes = [16, 16], strides = [1, 1]} : vector<16x192xbf16> to vector<16x16xbf16>
    %74 = vector.shape_cast %73 : vector<16x16xbf16> to vector<2x8x16xbf16>
    %75 = vector.extract_strided_slice %9 {offsets = [0, 112], sizes = [16, 16], strides = [1, 1]} : vector<16x192xbf16> to vector<16x16xbf16>
    %76 = vector.shape_cast %75 : vector<16x16xbf16> to vector<2x8x16xbf16>
    %77 = vector.extract_strided_slice %9 {offsets = [0, 176], sizes = [16, 16], strides = [1, 1]} : vector<16x192xbf16> to vector<16x16xbf16>
    %78 = vector.shape_cast %77 : vector<16x16xbf16> to vector<2x8x16xbf16>
    "tpu.trace_start"() <{level = 10 : i32, message = "bqd,bkd->bqk"}> : () -> ()
    %cst_20 = arith.constant dense<0.000000e+00> : vector<2x8x8xf32>
    %79 = tpu.matmul %74, %76, %cst_20 {dimension_numbers = #tpu.dot_dimension_numbers<[2], [2], [1], [1], [0, 0, 0, 1, 1, 1], [0], [0]>} : vector<2x8x16xbf16>, vector<2x8x16xbf16>, vector<2x8x8xf32> -> vector<2x8x8xf32>
    "tpu.trace_stop"() : () -> ()
    %80 = vector.broadcast %1 : f32 to vector<2x8x8xf32>
    %81 = arith.mulf %79, %80 : vector<2x8x8xf32>
    %cst_21 = arith.constant dense<0xFF800000> : vector<2x8xf32>
    %82 = vector.multi_reduction <maximumf>, %81, %cst_21 [2] : vector<2x8x8xf32> to vector<2x8xf32>
    %83 = vector.shape_cast %82 : vector<2x8xf32> to vector<2x8x1xf32>
    %84 = vector.broadcast %83 : vector<2x8x1xf32> to vector<2x8x8xf32>
    %85 = arith.subf %81, %84 : vector<2x8x8xf32>
    %86 = math.exp %85 : vector<2x8x8xf32>
    %cst_22 = arith.constant dense<0.000000e+00> : vector<2x8xf32>
    %87 = vector.multi_reduction <add>, %86, %cst_22 [2] : vector<2x8x8xf32> to vector<2x8xf32>
    %88 = vector.shape_cast %87 : vector<2x8xf32> to vector<2x8x1xf32>
    %89 = tpu.reciprocal %88 {approx = true} : vector<2x8x1xf32> -> vector<2x8x1xf32>
    %90 = vector.broadcast %89 : vector<2x8x1xf32> to vector<2x8x8xf32>
    %91 = arith.mulf %86, %90 : vector<2x8x8xf32>
    %92 = arith.truncf %91 : vector<2x8x8xf32> to vector<2x8x8xbf16>
    "tpu.trace_start"() <{level = 10 : i32, message = "bqk,bkd->bqd"}> : () -> ()
    %cst_23 = arith.constant dense<0.000000e+00> : vector<2x8x16xf32>
    %93 = tpu.matmul %92, %78, %cst_23 {dimension_numbers = #tpu.dot_dimension_numbers<[2], [1], [1], [2], [0, 0, 0, 1, 1, 2], [0], [0]>} : vector<2x8x8xbf16>, vector<2x8x16xbf16>, vector<2x8x16xf32> -> vector<2x8x16xf32>
    "tpu.trace_stop"() : () -> ()
    %94 = tpu.concatenate %30, %51, %72, %93 in 2 : vector<2x8x16xf32>, vector<2x8x16xf32>, vector<2x8x16xf32>, vector<2x8x16xf32> -> vector<2x8x64xf32>
    %cst_24 = arith.constant dense<0.000000e+00> : vector<2x8xf32>
    %95 = vector.multi_reduction <add>, %94, %cst_24 [2] : vector<2x8x64xf32> to vector<2x8xf32>
    %96 = vector.shape_cast %95 : vector<2x8xf32> to vector<2x8x1xf32>
    %cst_25 = arith.constant 6.400000e+01 : f32
    %97 = vector.broadcast %cst_25 : f32 to vector<2x8x1xf32>
    %98 = arith.divf %96, %97 : vector<2x8x1xf32>
    %99 = arith.mulf %94, %94 : vector<2x8x64xf32>
    %cst_26 = arith.constant dense<0.000000e+00> : vector<2x8xf32>
    %100 = vector.multi_reduction <add>, %99, %cst_26 [2] : vector<2x8x64xf32> to vector<2x8xf32>
    %101 = vector.shape_cast %100 : vector<2x8xf32> to vector<2x8x1xf32>
    %cst_27 = arith.constant 6.400000e+01 : f32
    %102 = vector.broadcast %cst_27 : f32 to vector<2x8x1xf32>
    %103 = arith.divf %101, %102 : vector<2x8x1xf32>
    %104 = arith.mulf %98, %98 : vector<2x8x1xf32>
    %105 = arith.subf %103, %104 : vector<2x8x1xf32>
    %106 = vector.broadcast %98 : vector<2x8x1xf32> to vector<2x8x64xf32>
    %107 = arith.subf %94, %106 : vector<2x8x64xf32>
    %cst_28 = arith.constant 9.99999974E-6 : f32
    %108 = vector.broadcast %cst_28 : f32 to vector<2x8x1xf32>
    %109 = arith.addf %105, %108 : vector<2x8x1xf32>
    %110 = math.rsqrt %109 : vector<2x8x1xf32>
    %111 = vector.broadcast %110 : vector<2x8x1xf32> to vector<2x8x64xf32>
    %112 = arith.mulf %107, %111 : vector<2x8x64xf32>
    %c0_29 = arith.constant 0 : index
    %c0_30 = arith.constant 0 : index
    %113 = vector.load %arg4[%c0_29, %c0_30] : memref<1x64xf32, #tpu.memory_space<vmem>>, vector<1x64xf32>
    %114 = vector.shape_cast %113 : vector<1x64xf32> to vector<1x1x64xf32>
    %115 = vector.broadcast %114 : vector<1x1x64xf32> to vector<2x8x64xf32>
    %116 = arith.mulf %112, %115 : vector<2x8x64xf32>
    %c0_31 = arith.constant 0 : index
    %c0_32 = arith.constant 0 : index
    %117 = vector.load %arg5[%c0_31, %c0_32] : memref<1x64xf32, #tpu.memory_space<vmem>>, vector<1x64xf32>
    %118 = vector.shape_cast %117 : vector<1x64xf32> to vector<1x1x64xf32>
    %119 = vector.broadcast %118 : vector<1x1x64xf32> to vector<2x8x64xf32>
    %120 = arith.addf %116, %119 : vector<2x8x64xf32>
    %121 = vector.shape_cast %120 : vector<2x8x64xf32> to vector<16x64xf32>
    %122 = arith.truncf %121 : vector<16x64xf32> to vector<16x64xbf16>
    %c0_33 = arith.constant 0 : index
    %c0_34 = arith.constant 0 : index
    %123 = vector.load %arg6[%c0_33, %c0_34] : memref<64x32xbf16, #tpu.memory_space<vmem>>, vector<64x32xbf16>
    %cst_35 = arith.constant dense<0.000000e+00> : vector<16x32xf32>
    %124 = tpu.matmul %122, %123, %cst_35 {dimension_numbers = #tpu.dot_dimension_numbers<[1], [0], [0], [1], [0, 0, 1, 1], [], []>} : vector<16x64xbf16>, vector<64x32xbf16>, vector<16x32xf32> -> vector<16x32xf32>
    %c0_36 = arith.constant 0 : index
    %c0_37 = arith.constant 0 : index
    %125 = vector.load %arg7[%c0_36, %c0_37] : memref<1x32xf32, #tpu.memory_space<vmem>>, vector<1x32xf32>
    %126 = vector.broadcast %125 : vector<1x32xf32> to vector<16x32xf32>
    %127 = arith.addf %124, %126 : vector<16x32xf32>
    %128 = math.tanh %127 : vector<16x32xf32>
    %c0_38 = arith.constant 0 : index
    %c0_39 = arith.constant 0 : index
    %129 = vector.load %arg8[%c0_38, %c0_39] : memref<1x32xf32, #tpu.memory_space<vmem>>, vector<1x32xf32>
    %130 = vector.broadcast %129 : vector<1x32xf32> to vector<16x32xf32>
    %131 = arith.mulf %128, %130 : vector<16x32xf32>
    %cst_40 = arith.constant dense<0.000000e+00> : vector<16xf32>
    %132 = vector.multi_reduction <add>, %131, %cst_40 [1] : vector<16x32xf32> to vector<16xf32>
    %133 = vector.shape_cast %132 : vector<16xf32> to vector<16x1xf32>
    %134 = vector.shape_cast %133 : vector<16x1xf32> to vector<2x8x1xf32>
    %cst_41 = arith.constant dense<0xFF800000> : vector<2x1xf32>
    %135 = vector.multi_reduction <maximumf>, %134, %cst_41 [1] : vector<2x8x1xf32> to vector<2x1xf32>
    %136 = vector.shape_cast %135 : vector<2x1xf32> to vector<2x1x1xf32>
    %137 = vector.broadcast %136 : vector<2x1x1xf32> to vector<2x8x1xf32>
    %138 = arith.subf %134, %137 : vector<2x8x1xf32>
    %139 = math.exp %138 : vector<2x8x1xf32>
    %cst_42 = arith.constant dense<0.000000e+00> : vector<2x1xf32>
    %140 = vector.multi_reduction <add>, %139, %cst_42 [1] : vector<2x8x1xf32> to vector<2x1xf32>
    %141 = vector.shape_cast %140 : vector<2x1xf32> to vector<2x1x1xf32>
    %142 = tpu.reciprocal %141 {approx = true} : vector<2x1x1xf32> -> vector<2x1x1xf32>
    %143 = vector.broadcast %142 : vector<2x1x1xf32> to vector<2x8x1xf32>
    %144 = arith.mulf %139, %143 : vector<2x8x1xf32>
    %145 = vector.broadcast %144 : vector<2x8x1xf32> to vector<2x8x64xf32>
    %146 = arith.mulf %145, %120 : vector<2x8x64xf32>
    %cst_43 = arith.constant dense<0.000000e+00> : vector<2x64xf32>
    %147 = vector.multi_reduction <add>, %146, %cst_43 [1] : vector<2x8x64xf32> to vector<2x64xf32>
    %c0_44 = arith.constant 0 : index
    %c0_45 = arith.constant 0 : index
    %148 = vector.load %arg9[%c0_44, %c0_45] : memref<2x64xf32, #tpu.memory_space<vmem>>, vector<2x64xf32>
    tpu.vector_store %arg9[%c0_44, %c0_45], %147 {strides = array<i32>} : memref<2x64xf32, #tpu.memory_space<vmem>>, vector<2x64xf32>,
    return
  }
  func.func @transform_0(%arg0: i32) -> (i32, i32, i32) {
    %c0_i32 = arith.constant 0 : i32
    %c0_i32_0 = arith.constant 0 : i32
    %c0_i32_1 = arith.constant 0 : i32
    return %arg0, %c0_i32, %c0_i32_0 : i32, i32, i32
  }
  func.func @transform_1(%arg0: i32) -> (i32, i32) {
    %c0_i32 = arith.constant 0 : i32
    %c0_i32_0 = arith.constant 0 : i32
    %c0_i32_1 = arith.constant 0 : i32
    return %c0_i32, %c0_i32_0 : i32, i32
  }
  func.func @transform_2(%arg0: i32) -> (i32, i32) {
    %c0_i32 = arith.constant 0 : i32
    %c0_i32_0 = arith.constant 0 : i32
    %c0_i32_1 = arith.constant 0 : i32
    return %c0_i32, %c0_i32_0 : i32, i32
  }
  func.func @transform_3(%arg0: i32) -> (i32, i32) {
    %c0_i32 = arith.constant 0 : i32
    %c0_i32_0 = arith.constant 0 : i32
    %c0_i32_1 = arith.constant 0 : i32
    return %c0_i32, %c0_i32_0 : i32, i32
  }
  func.func @transform_4(%arg0: i32) -> (i32, i32) {
    %c0_i32 = arith.constant 0 : i32
    %c0_i32_0 = arith.constant 0 : i32
    %c0_i32_1 = arith.constant 0 : i32
    return %c0_i32, %c0_i32_0 : i32, i32
  }
  func.func @transform_5(%arg0: i32) -> (i32, i32) {
    %c0_i32 = arith.constant 0 : i32
    %c0_i32_0 = arith.constant 0 : i32
    %c0_i32_1 = arith.constant 0 : i32
    return %c0_i32, %c0_i32_0 : i32, i32
  }
  func.func @transform_6(%arg0: i32) -> (i32, i32) {
    %c0_i32 = arith.constant 0 : i32
    %c0_i32_0 = arith.constant 0 : i32
    %c0_i32_1 = arith.constant 0 : i32
    return %c0_i32, %c0_i32_0 : i32, i32
  }
  func.func @transform_7(%arg0: i32) -> (i32, i32) {
    %c0_i32 = arith.constant 0 : i32
    %c0_i32_0 = arith.constant 0 : i32
    %c0_i32_1 = arith.constant 0 : i32
    return %c0_i32, %c0_i32_0 : i32, i32
  }
  func.func @transform_8(%arg0: i32) -> (i32, i32) {
    %c0_i32 = arith.constant 0 : i32
    %c0_i32_0 = arith.constant 0 : i32
    return %arg0, %c0_i32 : i32, i32
  }
}

</mosaic_0001>

<bundles_post_ra>
// kernel: tpu_custom_call.1
= control target key start
LH: loop header
LB: loop body
LE: loop exit
PB: predicated region body
PF: predicated region fallthrough
CT: control target
= control target key end

     0   :  { %13 = vsyncpa [#allocation3], 0  ;;  %s1924_s0 = inlined_call_operand.vmem [shape: bf16[2,8,64], index: 0, kind: input, shape index: {}]   ;;  %s1925_s1 = inlined_call_operand.hbm [shape: bf16[64,192], index: 1, kind: input, shape index: {}]   ;;  %s1926_s2 = inlined_call_operand.vmem [shape: f32[1,192], index: 2, kind: input, shape index: {}]   ;;  %s1927_s3 = inlined_call_operand.vmem [shape: f32[1,64], index: 3, kind: input, shape index: {}]   ;;  %s1928_s4 = inlined_call_operand.vmem [shape: f32[1,64], index: 4, kind: input, shape index: {}]   ;;  %s1929_s5 = inlined_call_operand.vmem [shape: bf16[64,32], index: 5, kind: input, shape index: {}]   ;;  %s1930_s6 = inlined_call_operand.vmem [shape: f32[1,32], index: 6, kind: input, shape index: {}]   ;;  %s1931_s7 = inlined_call_operand.vmem [shape: f32[1,32], index: 7, kind: input, shape index: {}]   ;;  %s1932_s8 = inlined_call_operand.hbm [shape: f32[2,64], index: 8, kind: output, shape index: {}]  }
   0x1   :  { %14 = vsyncpa [#allocation4], 0  ;;  %s1623_s27 = smov [#allocation2]   ;;  %s1575_s9 = scalar_lea.hbm %s1925_s1, 1024 }
   0x2   :  { %s22_s28 = sshll.u32 %s1623_s27, 4  ;;  %p1576_p0 = scmp.ne.s32.totalorder %s1925_s1, %s1575_s9  ;;  %s23_s28 = int_to_ptr.vmem [resolvable:$true] %s22_s28 }
   0x3   :  { %p1579_p1 = scmp.lt.u32.totalorder %s1575_s9, %s1925_s1 }
   0x5   :  { %p1581_p2 = pnand %p1579_p1, %p1576_p0 }
   0x7   :  { %1584 = shalt.err (!%p1581_p2)
}
   0x8   :  { %s1585_s14 = scalar_lea.vmem %s23_s28, 1024  ;;  %p1590_p4 = scmp.lt.s32.totalorder %s23_s28, %s23_s28 }
   0x9   :  { %p1586_p3 = scmp.ne.s32.totalorder %s23_s28, %s1585_s14  ;;  %p1591_p5 = scmp.lt.s32.totalorder %s1585_s14, %s1585_s14 }
   0xb   :  { %p1592_p6 = por %p1591_p5, %p1590_p4 }
   0xd   :  { %p1593_p7 = pnand %p1592_p6, %p1586_p3 }
   0xf   :  { %1596 = shalt.err (!%p1593_p7)
}
  0x10   :  { %s1624_s15 = smov 128   ;;  %s1625_s16 = smov 8  }
  0x11   :  { %28 = dma.hbm_to_vmem [thread:$0]  %s1925_s1, 1024, %s23_s28, [#allocation3], %s1624_s15, %s1624_s15, %s1625_s16  }
  0x12   :  { %1619 = dma.done.wait [#allocation3], 1024  }
  0x13   :  { %1620 = vsyncadd [#allocation3], 4294966272  ;;  %v1626_v0 = vmov 0   ;;  %v1510_v1 = vld [vmem:[#allocation2 + $0x4] ss:$8 sps:$4 sm:$0xff]   ;;  %vm112_vm0 = vcmask 523264   ;;  %v57_v10 = vlaneseq }
  0x14   :  { %148 = vmatprep.mubr.bf16.mxu0 %v1626_v0  ;;  %v1512_v2 = vld [vmem:[#allocation2] ss:$8 sps:$4 sm:$0xff]   ;;  %116 = vmatprep.subr.bf16.mxu0 %v1510_v1  ;;  %v1513_v3 = vld [vmem:[#allocation2 + $0x14] ss:$8 sps:$4 sm:$0xff]   ;;  %v1515_v4 = vld [vmem:[#allocation2 + $0x10] ss:$8 sps:$4 sm:$0xff]  }
  0x15   :  { %117 = vmatpush1.bf16.msra.mxu0 %v1512_v2  ;;  %v1516_v5 = vld [vmem:[#allocation2 + $0x24] ss:$8 sps:$4 sm:$0xff]   ;;  %v1518_v6 = vld [vmem:[#allocation2 + $0x20] ss:$8 sps:$4 sm:$0xff]   ;;  %v1519_v7 = vld [vmem:[#allocation2 + $0x34] ss:$8 sps:$4 sm:$0xff]  }
  0x16   :  { %118 = vmatprep.subr.bf16.mxu0 %v1513_v3  ;;  %v1521_v8 = vld [vmem:[#allocation2 + $0x30] ss:$8 sps:$4 sm:$0xff]   ;;  %v1522_v9 = vld [vmem:[%s1924_s0] sm:$0xff]   ;;  %v58_v11 = vshrl.u32 %v57_v10, 7  ;;  %v1627_v12 = vmov 0.0   ;;  %vm1628_vm1 = vmmov 0  }
  0x17   :  { %1388 = vmatprep.subr.bf16.mxu1 %v1627_v12  ;;  %v55_v14 = vld [vmem:[%s1926_s2] sm:$0x3]  ;;  %1390 = vmatprep.mubr.msk.bf16.mxu1 %vm1628_vm1, %v1627_v12  ;;  %s1629_s0 = smov 64   ;;  %vm173_vm2 = vcmask 130048   ;;  %vm298_vm3 = vcmask 1043456   ;;  %vm270_vm4 = vcmask 64512  }
  0x18   :  { %v59_v13 = vsub.s32 0, %v58_v11  ;;  %v63_v16 = vsub.s32 1, %v58_v11  ;;  %s1630_s2 = smov 48   ;;  %s1631_s22 = smov 112   ;;  %vm1083_vm5 = vcmask 392192   ;;  %vm1080_vm6 = vcmask 261120  }
  0x19   :  { %119 = vmatpush1.bf16.msra.mxu0 %v1515_v4  ;;  %s1632_s23 = smov 32   ;;  %s1633_s24 = smov 96   ;;  %vm1288_vm7 = vcmask 1041409   ;;  %vm1291_vm8 = vcmask 517120  }
  0x1a   :  { %120 = vmatprep.subr.bf16.mxu0 %v1516_v5  ;;  %v60_v15 = vrot.slane %v55_v14, %v59_v13  ;;  %v64_v20 = vrot.slane %v55_v14, %v63_v16  ;;  %s1634_s25 = smov 16   ;;  %s1635_s26 = smov 80  }
  0x1d   :  { %121 = vmatpush1.bf16.msra.mxu0 %v1518_v6 }
  0x1e   :  { %122 = vmatprep.subr.bf16.mxu0 %v1519_v7 }
  0x21   :  { %123 = vmatpush1.bf16.msra.mxu0 %v1521_v8 }
  0x22   :  { %1412 = vmatprep.subr.bf16.mxu0 %v1627_v12 }
  0x24   :  { %1317 = vmatmul.mubr.msk.bf16.vlgmr.msra.gmra.mrb[0].mxu0 %vm112_vm0, %v1522_v9 }
  0x25   :  { %1414 = vmatprep.mubr.msk.bf16.mxu0 %vm1628_vm1, %v1627_v12 }
  0xf7   :  { %v150_v17 = vpop.f32.mrb[0].mxu0 }
  0xf8   :  { %v151_v18 = vadd.f32 %v150_v17, %v60_v15  ;;  %v152_v19 = vpop.f32.mrb[1].mxu0 }
  0xf9   :  { %v154_v21 = vpop.f32.mrb[2].mxu0  ;;  %v153_v30 = vadd.f32 %v152_v19, %v64_v20 }
  0xfa   :  { %v1707_v22 = vpack.c.bf16 %v151_v18, %v151_v18  ;;  %v155_v23 = vadd.f32 %v154_v21, %v60_v15  ;;  %v156_v24 = vpop.f32.mrb[3].mxu0 }
  0xfb   :  { %v1709_v25 = vadd.f32 %v156_v24, %v64_v20  ;;  %v1723_v32 = vpack.c.bf16 %v153_v30, %v153_v30 }
  0xfc   :  { %171 = vrot.lane.b32.xlu0 %v1707_v22, %s1629_s0  ;;  %v1712_v26 = vpack.c.bf16 %v155_v23, %v155_v23 }
  0xfd   :  { %v300_v33 = vsel %vm298_vm3, %v1723_v32, 0  ;;  %v1748_v62 = vpack.c.bf16 %v1709_v25, %v1709_v25 }
  0xff   :  { %v346_v2 = vsel %vm298_vm3, %v1748_v62, 0 }
 0x100   :  { %220 = vrot.lane.b32.xlu0 %v1712_v26, %s1629_s0 }
 0x16e   :  { %v172_v27 = vpop.permute.xlu0 %171 }
 0x16f   :  { %v178_v28 = vsel %vm173_vm2, %v172_v27, 0 }
 0x170   :  { %1389 = vmatpush3.bf16.xpose.msra.mxu1 %v178_v28 }
 0x171   :  { %1394 = vmatprep.subr.bf16.mxu1 %v1627_v12 }
 0x172   :  { %v221_v29 = vpop.permute.xlu0 %220 }
 0x173   :  { %v226_v31 = vsel %vm173_vm2, %v221_v29, 0 }
 0x177   :  { %1391 = vmatmul.mubr.msk.bf16.vlgmr.msra.gmra.mrb[0].mxu1 %vm173_vm2, %v1707_v22 }
 0x178   :  { %1395 = vmatpush3.bf16.xpose.msra.mxu1 %v226_v31  ;;  %1396 = vmatprep.mubr.msk.bf16.mxu1 %vm1628_vm1, %v1627_v12 }
 0x179   :  { %1400 = vmatprep.subr.bf16.mxu1 %v1627_v12 }
 0x17f   :  { %1397 = vmatmul.mubr.msk.bf16.vlgmr.msra.gmra.mrb[4].mxu1 %vm173_vm2, %v1712_v26 }
 0x180   :  { %1401 = vmatpush3.bf16.msra.mxu1 %v300_v33  ;;  %1402 = vmatprep.mubr.msk.bf16.mxu1 %vm1628_vm1, %v1627_v12 }
 0x181   :  { %1406 = vmatprep.subr.bf16.mxu1 %v1627_v12 }
 0x24a   :  { %v214_v34 = vpop.f32.mrb[0].mxu1 }
 0x24b   :  { %v268_v35 = vmul.f32 0.25, %v214_v34  ;;  %v1392_v36 = vpop.f32.mrb[1].mxu1 }
 0x24c   :  { %v217_v37 = vpop.f32.mrb[2].mxu1 }
 0x24d   :  { %v1393_v38 = vpop.f32.mrb[3].mxu1  ;;  %v271_v39 = vsel %vm270_vm4, %v268_v35, -inf }
 0x24e   :  { %272 = vmax.xlane.f32.xlu1 %v271_v39 }
 0x252   :  { %v262_v40 = vpop.f32.mrb[4].mxu1 }
 0x253   :  { %v269_v41 = vmul.f32 0.25, %v262_v40  ;;  %v1398_v42 = vpop.f32.mrb[5].mxu1 }
 0x254   :  { %v265_v43 = vpop.f32.mrb[6].mxu1 }
 0x255   :  { %v1399_v44 = vpop.f32.mrb[7].mxu1  ;;  %v274_v45 = vsel %vm270_vm4, %v269_v41, -inf }
 0x256   :  { %275 = vmax.xlane.f32.xlu1 %v274_v45 }
 0x267   :  { %390 = vrot.lane.b32.xlu1 %v1707_v22, %s1630_s2 }
 0x26b   :  { %440 = vrot.lane.b32.xlu1 %v1712_v26, %s1630_s2 }
 0x2db   :  { %v273_v46 = vpop.xlane.xlu1 %272 }
 0x2dc   :  { %v277_v47 = vsub.f32 %v268_v35, %v273_v46 }
 0x2de   :  { %v279_v48 = vmul.f32 1.442695, %v277_v47 }
 0x2e0   :  { %1527 = vpow2.f32 %v279_v48 }
 0x2e3   :  { %v276_v49 = vpop.xlane.xlu1 %275 }
 0x2e4   :  { %v278_v50 = vsub.f32 %v269_v41, %v276_v49 }
 0x2e6   :  { %v281_v51 = vmul.f32 1.442695, %v278_v50 }
 0x2e7   :  { %v391_v52 = vpop.permute.xlu1 %390 }
 0x2e8   :  { %1529 = vpow2.f32 %v281_v51  ;;  %v396_v53 = vsel %vm173_vm2, %v391_v52, 0 }
 0x2e9   :  { %1413 = vmatpush3.bf16.xpose.msra.mxu0 %v396_v53 }
 0x2ea   :  { %v1528_v54 = vpop.eup %1527  ;;  %1424 = vmatprep.subr.bf16.mxu0 %v1627_v12 }
 0x2eb   :  { %v283_v55 = vsel %vm270_vm4, %v1528_v54, 0.0  ;;  %v441_v59 = vpop.permute.xlu1 %440 }
 0x2ec   :  { %284 = vadd.xlane.f32.xlu0 %v283_v55  ;;  %v446_v6 = vsel %vm173_vm2, %v441_v59, 0 }
 0x2f2   :  { %v1530_v56 = vpop.eup %1529 }
 0x2f3   :  { %v286_v57 = vsel %vm270_vm4, %v1530_v56, 0.0 }
 0x2f4   :  { %287 = vadd.xlane.f32.xlu1 %v286_v57 }
 0x305   :  { %388 = vrot.lane.b32.xlu1 %v1707_v22, %s1631_s22 }
 0x309   :  { %438 = vrot.lane.b32.xlu1 %v1712_v26, %s1631_s22 }
 0x379   :  { %v285_v58 = vpop.xlane.xlu0 %284 }
 0x37a   :  { %1531 = vrcp.f32 %v285_v58 }
 0x381   :  { %v288_v60 = vpop.xlane.xlu1 %287 }
 0x382   :  { %1533 = vrcp.f32 %v288_v60 }
 0x384   :  { %v1532_v61 = vpop.eup %1531 }
 0x385   :  { %v291_v63 = vmul.f32 %v1532_v61, %v1528_v54  ;;  %v389_v0 = vpop.permute.xlu1 %388 }
 0x386   :  { %1415 = vmatmul.mubr.msk.bf16.vlgmr.msra.gmra.mrb[4].mxu0 %vm173_vm2, %v389_v0 }
 0x387   :  { %v293_v1 = vpack.c.bf16 %v291_v63, %v291_v63  ;;  %1426 = vmatprep.mubr.msk.bf16.mxu0 %vm1628_vm1, %v1627_v12 }
 0x389   :  { %1403 = vmatmul.mubr.msk.bf16.vlgmr.msra.gmra.mrb[8].mxu1 %vm270_vm4, %v293_v1  ;;  %v439_v7 = vpop.permute.xlu1 %438 }
 0x38a   :  { %1407 = vmatpush3.bf16.msra.mxu1 %v346_v2  ;;  %1408 = vmatprep.mubr.msk.bf16.mxu1 %vm1628_vm1, %v1627_v12 }
 0x38b   :  { %1418 = vmatprep.subr.bf16.mxu1 %v1627_v12 }
 0x38c   :  { %v1534_v3 = vpop.eup %1533 }
 0x38d   :  { %v292_v4 = vmul.f32 %v1534_v3, %v1530_v56 }
 0x38f   :  { %v294_v5 = vpack.c.bf16 %v292_v4, %v292_v4 }
 0x391   :  { %1409 = vmatmul.mubr.msk.bf16.vlgmr.msra.gmra.mrb[12].mxu1 %vm270_vm4, %v294_v5 }
 0x392   :  { %1420 = vmatprep.mubr.msk.bf16.mxu1 %vm1628_vm1, %v1627_v12 }
 0x393   :  { %1419 = vmatpush3.bf16.xpose.msra.mxu1 %v446_v6 }
 0x394   :  { %1430 = vmatprep.subr.bf16.mxu1 %v1627_v12 }
 0x39a   :  { %1421 = vmatmul.mubr.msk.bf16.vlgmr.msra.gmra.mrb[16].mxu1 %vm173_vm2, %v439_v7 }
 0x39b   :  { %1432 = vmatprep.mubr.msk.bf16.mxu1 %vm1628_vm1, %v1627_v12 }
 0x459   :  { %v432_v8 = vpop.f32.mrb[4].mxu0 }
 0x45a   :  { %v488_v9 = vmul.f32 0.25, %v432_v8  ;;  %v1416_v10 = vpop.f32.mrb[5].mxu0 }
 0x45b   :  { %v435_v11 = vpop.f32.mrb[6].mxu0 }
 0x45c   :  { %v1767_v13 = vpop.f32.mrb[8].mxu1  ;;  %v1417_v14 = vpop.f32.mrb[7].mxu0  ;;  %v490_v15 = vsel %vm270_vm4, %v488_v9, -inf }
 0x45d   :  { %491 = vmax.xlane.f32.xlu0 %v490_v15  ;;  %v1404_v16 = vpop.f32.mrb[9].mxu1 }
 0x45e   :  { %v339_v17 = vpop.f32.mrb[10].mxu1 }
 0x45f   :  { %v1405_v18 = vpop.f32.mrb[11].mxu1 }
 0x464   :  { %v1770_v19 = vpop.f32.mrb[12].mxu1 }
 0x465   :  { %v1410_v20 = vpop.f32.mrb[13].mxu1 }
 0x466   :  { %v385_v21 = vpop.f32.mrb[14].mxu1 }
 0x467   :  { %v1411_v23 = vpop.f32.mrb[15].mxu1 }
 0x46d   :  { %v482_v24 = vpop.f32.mrb[16].mxu1 }
 0x46e   :  { %v489_v25 = vmul.f32 0.25, %v482_v24  ;;  %v1422_v27 = vpop.f32.mrb[17].mxu1 }
 0x46f   :  { %v485_v28 = vpop.f32.mrb[18].mxu1 }
 0x470   :  { %v1423_v29 = vpop.f32.mrb[19].mxu1  ;;  %v493_v30 = vsel %vm270_vm4, %v489_v25, -inf }
 0x471   :  { %494 = vmax.xlane.f32.xlu1 %v493_v30 }
 0x482   :  { %662 = vrot.lane.b32.xlu1 %v1712_v26, %s1632_s23 }
 0x4ea   :  { %v492_v31 = vpop.xlane.xlu0 %491 }
 0x4eb   :  { %v496_v33 = vsub.f32 %v488_v9, %v492_v31 }
 0x4ed   :  { %v498_v34 = vmul.f32 1.442695, %v496_v33 }
 0x4ef   :  { %1535 = vpow2.f32 %v498_v34 }
 0x4f9   :  { %v1536_v35 = vpop.eup %1535 }
 0x4fa   :  { %v502_v36 = vsel %vm270_vm4, %v1536_v35, 0.0 }
 0x4fb   :  { %503 = vadd.xlane.f32.xlu0 %v502_v36 }
 0x4fe   :  { %v495_v37 = vpop.xlane.xlu1 %494 }
 0x4ff   :  { %v497_v38 = vsub.f32 %v489_v25, %v495_v37 }
 0x501   :  { %v500_v39 = vmul.f32 1.442695, %v497_v38 }
 0x502   :  { %v663_v56 = vpop.permute.xlu1 %662 }
 0x503   :  { %1537 = vpow2.f32 %v500_v39  ;;  %v668_v58 = vsel %vm173_vm2, %v663_v56, 0 }
 0x50d   :  { %v1538_v40 = vpop.eup %1537 }
 0x50e   :  { %v505_v41 = vsel %vm270_vm4, %v1538_v40, 0.0 }
 0x511   :  { %514 = vrot.lane.b32.xlu0 %v1723_v32, %s1631_s22 }
 0x515   :  { %562 = vrot.lane.b32.xlu0 %v1748_v62, %s1631_s22 }
 0x534   :  { %506 = vadd.xlane.f32.xlu0 %v505_v41 }
 0x54a   :  { %612 = vrot.lane.b32.xlu0 %v1707_v22, %s1632_s23 }
 0x54e   :  { %610 = vrot.lane.b32.xlu0 %v1707_v22, %s1633_s24 }
 0x552   :  { %660 = vrot.lane.b32.xlu0 %v1712_v26, %s1633_s24 }
 0x588   :  { %v504_v42 = vpop.xlane.xlu0 %503 }
 0x589   :  { %1539 = vrcp.f32 %v504_v42 }
 0x58c   :  { %v515_v43 = vpop.permute.xlu0 %514 }
 0x58d   :  { %v520_v44 = vsel %vm298_vm3, %v515_v43, 0 }
 0x58e   :  { %1425 = vmatpush3.bf16.msra.mxu0 %v520_v44 }
 0x58f   :  { %1436 = vmatprep.subr.bf16.mxu0 %v1627_v12 }
 0x590   :  { %v563_v45 = vpop.permute.xlu0 %562 }
 0x591   :  { %v568_v46 = vsel %vm298_vm3, %v563_v45, 0 }
 0x592   :  { %1431 = vmatpush3.bf16.msra.mxu1 %v568_v46 }
 0x593   :  { %v1540_v47 = vpop.eup %1539  ;;  %1442 = vmatprep.subr.bf16.mxu1 %v1627_v12 }
 0x594   :  { %v510_v48 = vmul.f32 %v1540_v47, %v1536_v35 }
 0x596   :  { %v512_v49 = vpack.c.bf16 %v510_v48, %v510_v48 }
 0x598   :  { %1427 = vmatmul.mubr.msk.bf16.vlgmr.msra.gmra.mrb[8].mxu0 %vm270_vm4, %v512_v49 }
 0x599   :  { %1438 = vmatprep.mubr.msk.bf16.mxu0 %vm1628_vm1, %v1627_v12 }
 0x5c1   :  { %v507_v50 = vpop.xlane.xlu0 %506 }
 0x5c2   :  { %1541 = vrcp.f32 %v507_v50 }
 0x5c5   :  { %v613_v51 = vpop.permute.xlu0 %612 }
 0x5c6   :  { %v618_v52 = vsel %vm173_vm2, %v613_v51, 0 }
 0x5c7   :  { %1437 = vmatpush3.bf16.xpose.msra.mxu0 %v618_v52 }
 0x5c8   :  { %1448 = vmatprep.subr.bf16.mxu0 %v1627_v12 }
 0x5c9   :  { %v611_v55 = vpop.permute.xlu0 %610 }
 0x5cc   :  { %v1542_v53 = vpop.eup %1541 }
 0x5cd   :  { %v511_v54 = vmul.f32 %v1542_v53, %v1538_v40  ;;  %v661_v59 = vpop.permute.xlu0 %660 }
 0x5ce   :  { %1439 = vmatmul.mubr.msk.bf16.vlgmr.msra.gmra.mrb[12].mxu0 %vm173_vm2, %v611_v55 }
 0x5cf   :  { %v513_v57 = vpack.c.bf16 %v511_v54, %v511_v54  ;;  %1450 = vmatprep.mubr.msk.bf16.mxu0 %vm1628_vm1, %v1627_v12 }
 0x5d1   :  { %1433 = vmatmul.mubr.msk.bf16.vlgmr.msra.gmra.mrb[20].mxu1 %vm270_vm4, %v513_v57 }
 0x5d2   :  { %1443 = vmatpush3.bf16.xpose.msra.mxu1 %v668_v58  ;;  %1444 = vmatprep.mubr.msk.bf16.mxu1 %vm1628_vm1, %v1627_v12 }
 0x5d3   :  { %1454 = vmatprep.subr.bf16.mxu1 %v1627_v12 }
 0x5d9   :  { %1445 = vmatmul.mubr.msk.bf16.vlgmr.msra.gmra.mrb[24].mxu1 %vm173_vm2, %v661_v59 }
 0x5da   :  { %1456 = vmatprep.mubr.msk.bf16.mxu1 %vm1628_vm1, %v1627_v12 }
 0x66b   :  { %v1807_v60 = vpop.f32.mrb[8].mxu0 }
 0x66c   :  { %v1428_v61 = vpop.f32.mrb[9].mxu0 }
 0x66d   :  { %v559_v63 = vpop.f32.mrb[10].mxu0 }
 0x66e   :  { %v1429_v0 = vpop.f32.mrb[11].mxu0 }
 0x6a1   :  { %v654_v1 = vpop.f32.mrb[12].mxu0 }
 0x6a2   :  { %v710_v2 = vmul.f32 0.25, %v654_v1  ;;  %v1440_v3 = vpop.f32.mrb[13].mxu0 }
 0x6a3   :  { %v657_v4 = vpop.f32.mrb[14].mxu0 }
 0x6a4   :  { %v1809_v5 = vpop.f32.mrb[20].mxu1  ;;  %v1441_v6 = vpop.f32.mrb[15].mxu0  ;;  %v712_v7 = vsel %vm270_vm4, %v710_v2, -inf }
 0x6a5   :  { %v1434_v8 = vpop.f32.mrb[21].mxu1  ;;  %713 = vmax.xlane.f32.xlu0 %v712_v7 }
 0x6a6   :  { %v607_v9 = vpop.f32.mrb[22].mxu1 }
 0x6a7   :  { %v1435_v10 = vpop.f32.mrb[23].mxu1 }
 0x6ac   :  { %v704_v11 = vpop.f32.mrb[24].mxu1 }
 0x6ad   :  { %v711_v14 = vmul.f32 0.25, %v704_v11  ;;  %v1446_v15 = vpop.f32.mrb[25].mxu1 }
 0x6ae   :  { %v707_v16 = vpop.f32.mrb[26].mxu1 }
 0x6af   :  { %v1447_v17 = vpop.f32.mrb[27].mxu1  ;;  %v715_v18 = vsel %vm270_vm4, %v711_v14, -inf }
 0x6b0   :  { %716 = vmax.xlane.f32.xlu1 %v715_v18 }
 0x6c1   :  { %784 = vrot.lane.b32.xlu1 %v1748_v62, %s1633_s24 }
 0x6c5   :  { %834 = vrot.lane.b32.xlu1 %v1707_v22, %s1634_s25 }
 0x6c9   :  { %832 = vrot.lane.b32.xlu1 %v1707_v22, %s1635_s26 }
 0x732   :  { %v714_v20 = vpop.xlane.xlu0 %713 }
 0x733   :  { %v718_v21 = vsub.f32 %v710_v2, %v714_v20 }
 0x735   :  { %v720_v23 = vmul.f32 1.442695, %v718_v21 }
 0x737   :  { %1543 = vpow2.f32 %v720_v23 }
 0x73d   :  { %v717_v24 = vpop.xlane.xlu1 %716 }
 0x73e   :  { %v719_v30 = vsub.f32 %v711_v14, %v717_v24 }
 0x740   :  { %v722_v22 = vmul.f32 1.442695, %v719_v30 }
 0x741   :  { %v1544_v25 = vpop.eup %1543  ;;  %v785_v27 = vpop.permute.xlu1 %784 }
 0x742   :  { %v790_v28 = vsel %vm298_vm3, %v785_v27, 0  ;;  %v724_v29 = vsel %vm270_vm4, %v1544_v25, 0.0  ;;  %1545 = vpow2.f32 %v722_v22 }
 0x743   :  { %1455 = vmatpush3.bf16.msra.mxu1 %v790_v28  ;;  %725 = vadd.xlane.f32.xlu0 %v724_v29 }
 0x744   :  { %1466 = vmatprep.subr.bf16.mxu1 %v1627_v12 }
 0x745   :  { %v835_v39 = vpop.permute.xlu1 %834 }
 0x746   :  { %v840_v41 = vsel %vm173_vm2, %v835_v39, 0 }
 0x74c   :  { %v1546_v31 = vpop.eup %1545 }
 0x74d   :  { %v727_v33 = vsel %vm270_vm4, %v1546_v31, 0.0 }
 0x759   :  { %736 = vrot.lane.b32.xlu0 %v1723_v32, %s1633_s24 }
 0x778   :  { %728 = vadd.xlane.f32.xlu0 %v727_v33 }
 0x78e   :  { %884 = vrot.lane.b32.xlu0 %v1712_v26, %s1634_s25 }
 0x792   :  { %882 = vrot.lane.b32.xlu0 %v1712_v26, %s1635_s26  ;;  %v833_v26 = vpop.permute.xlu1 %832 }
 0x7d0   :  { %v726_v34 = vpop.xlane.xlu0 %725 }
 0x7d1   :  { %1547 = vrcp.f32 %v726_v34 }
 0x7d4   :  { %v737_v35 = vpop.permute.xlu0 %736 }
 0x7d5   :  { %v742_v36 = vsel %vm298_vm3, %v737_v35, 0 }
 0x7d6   :  { %1449 = vmatpush3.bf16.msra.mxu0 %v742_v36 }
 0x7d7   :  { %1460 = vmatprep.subr.bf16.mxu0 %v1627_v12 }
 0x7db   :  { %v1548_v37 = vpop.eup %1547 }
 0x7dc   :  { %v732_v38 = vmul.f32 %v1548_v37, %v1544_v25 }
 0x7de   :  { %v734_v40 = vpack.c.bf16 %v732_v38, %v732_v38 }
 0x7e0   :  { %1451 = vmatmul.mubr.msk.bf16.vlgmr.msra.gmra.mrb[16].mxu0 %vm270_vm4, %v734_v40 }
 0x7e1   :  { %1461 = vmatpush3.bf16.xpose.msra.mxu0 %v840_v41  ;;  %1462 = vmatprep.mubr.msk.bf16.mxu0 %vm1628_vm1, %v1627_v12 }
 0x7e2   :  { %1472 = vmatprep.subr.bf16.mxu0 %v1627_v12 }
 0x7e8   :  { %1463 = vmatmul.mubr.msk.bf16.vlgmr.msra.gmra.mrb[20].mxu0 %vm173_vm2, %v833_v26 }
 0x7e9   :  { %1474 = vmatprep.mubr.msk.bf16.mxu0 %vm1628_vm1, %v1627_v12 }
 0x805   :  { %v729_v42 = vpop.xlane.xlu0 %728 }
 0x806   :  { %1549 = vrcp.f32 %v729_v42 }
 0x809   :  { %v885_v45 = vpop.permute.xlu0 %884 }
 0x80a   :  { %v890_v47 = vsel %vm173_vm2, %v885_v45, 0 }
 0x80d   :  { %v883_v48 = vpop.permute.xlu0 %882 }
 0x810   :  { %v1550_v43 = vpop.eup %1549 }
 0x811   :  { %v733_v44 = vmul.f32 %v1550_v43, %v1546_v31 }
 0x813   :  { %v735_v46 = vpack.c.bf16 %v733_v44, %v733_v44 }
 0x815   :  { %1457 = vmatmul.mubr.msk.bf16.vlgmr.msra.gmra.mrb[28].mxu1 %vm270_vm4, %v735_v46 }
 0x816   :  { %1467 = vmatpush3.bf16.xpose.msra.mxu1 %v890_v47  ;;  %1468 = vmatprep.mubr.msk.bf16.mxu1 %vm1628_vm1, %v1627_v12 }
 0x817   :  { %1478 = vmatprep.subr.bf16.mxu1 %v1627_v12 }
 0x81d   :  { %1469 = vmatmul.mubr.msk.bf16.vlgmr.msra.gmra.mrb[32].mxu1 %vm173_vm2, %v883_v48 }
 0x81e   :  { %1480 = vmatprep.mubr.msk.bf16.mxu1 %vm1628_vm1, %v1627_v12 }
 0x8b3   :  { %v778_v49 = vpop.f32.mrb[16].mxu0 }
 0x8b4   :  { %v1452_v50 = vpop.f32.mrb[17].mxu0 }
 0x8b5   :  { %v781_v51 = vpop.f32.mrb[18].mxu0 }
 0x8b6   :  { %v1453_v52 = vpop.f32.mrb[19].mxu0 }
 0x8bb   :  { %v876_v53 = vpop.f32.mrb[20].mxu0 }
 0x8bc   :  { %v932_v54 = vmul.f32 0.25, %v876_v53  ;;  %v1464_v55 = vpop.f32.mrb[21].mxu0 }
 0x8bd   :  { %v879_v56 = vpop.f32.mrb[22].mxu0  ;;  %v1523_v55 = vld [vmem:[%s1929_s5] sm:$0xff]  }
 0x8be   :  { %v1465_v57 = vpop.f32.mrb[23].mxu0  ;;  %v934_v58 = vsel %vm270_vm4, %v932_v54, -inf  ;;  %v1525_v56 = vld [vmem:[%s1929_s5 + $0x10] sm:$0xff]  }
 0x8bf   :  { %935 = vmax.xlane.f32.xlu1 %v934_v58  ;;  %v1526_v57 = vld [vmem:[%s1929_s5 + $0x18] sm:$0xff]  }
 0x8e8   :  { %v826_v59 = vpop.f32.mrb[28].mxu1 }
 0x8e9   :  { %v1458_v61 = vpop.f32.mrb[29].mxu1 }
 0x8ea   :  { %v829_v63 = vpop.f32.mrb[30].mxu1 }
 0x8eb   :  { %v1459_v0 = vpop.f32.mrb[31].mxu1 }
 0x8f0   :  { %v926_v1 = vpop.f32.mrb[32].mxu1 }
 0x8f1   :  { %v933_v2 = vmul.f32 0.25, %v926_v1  ;;  %v1470_v3 = vpop.f32.mrb[33].mxu1 }
 0x8f2   :  { %v929_v4 = vpop.f32.mrb[34].mxu1 }
 0x8f3   :  { %v1471_v6 = vpop.f32.mrb[35].mxu1  ;;  %v937_v7 = vsel %vm270_vm4, %v933_v2, -inf }
 0x8f4   :  { %938 = vmax.xlane.f32.xlu0 %v937_v7 }
 0x94c   :  { %v936_v8 = vpop.xlane.xlu1 %935 }
 0x94d   :  { %v940_v9 = vsub.f32 %v932_v54, %v936_v8 }
 0x94f   :  { %v942_v10 = vmul.f32 1.442695, %v940_v9 }
 0x951   :  { %1551 = vpow2.f32 %v942_v10 }
 0x95b   :  { %v1552_v11 = vpop.eup %1551 }
 0x95c   :  { %v946_v14 = vsel %vm270_vm4, %v1552_v11, 0.0 }
 0x95d   :  { %947 = vadd.xlane.f32.xlu0 %v946_v14 }
 0x973   :  { %958 = vrot.lane.b32.xlu0 %v1723_v32, %s1635_s26 }
 0x977   :  { %1058 = vrot.lane.b32.xlu0 %v1809_v5, %s1634_s25 }
 0x97b   :  { %1066 = vrot.lane.b32.xlu0 %v826_v59, %s1632_s23 }
 0x981   :  { %v939_v15 = vpop.xlane.xlu0 %938 }
 0x982   :  { %v941_v16 = vsub.f32 %v933_v2, %v939_v15 }
 0x984   :  { %v944_v17 = vmul.f32 1.442695, %v941_v16 }
 0x986   :  { %1553 = vpow2.f32 %v944_v17 }
 0x990   :  { %v1554_v18 = vpop.eup %1553 }
 0x991   :  { %v949_v20 = vsel %vm270_vm4, %v1554_v18, 0.0 }
 0x992   :  { %950 = vadd.xlane.f32.xlu1 %v949_v20 }
 0x9a3   :  { %1006 = vrot.lane.b32.xlu1 %v1748_v62, %s1635_s26 }
 0x9a7   :  { %1056 = vrot.lane.b32.xlu1 %v1807_v60, %s1634_s25 }
 0x9ab   :  { %1064 = vrot.lane.b32.xlu1 %v778_v49, %s1632_s23 }
 0x9ea   :  { %v948_v32 = vpop.xlane.xlu0 %947 }
 0x9eb   :  { %1555 = vrcp.f32 %v948_v32  ;;  %v1339_v32 = vld [vmem:[%s1928_s4] ss:$0 sm:$0xff] }
 0x9ee   :  { %v959_v5 = vpop.permute.xlu0 %958 }
 0x9ef   :  { %v964_v21 = vsel %vm298_vm3, %v959_v5, 0 }
 0x9f0   :  { %1473 = vmatpush3.bf16.msra.mxu0 %v964_v21 }
 0x9f1   :  { %1484 = vmatprep.subr.bf16.mxu0 %v1627_v12 }
 0x9f2   :  { %v1059_v45 = vpop.permute.xlu0 %1058 }
 0x9f3   :  { %v1079_v47 = vsel %vm173_vm2, %v1770_v19, %v1059_v45  ;;  %v1524_v19 = vld [vmem:[%s1929_s5 + $0x8] sm:$0xff]  }
 0x9f5   :  { %v1556_v23 = vpop.eup %1555 }
 0x9f6   :  { %v954_v24 = vmul.f32 %v1556_v23, %v1552_v11  ;;  %v1067_v46 = vpop.permute.xlu0 %1066 }
 0x9f7   :  { %v1082_v48 = vsel %vm1080_vm6, %v1079_v47, %v1067_v46 }
 0x9f8   :  { %v956_v25 = vpack.c.bf16 %v954_v24, %v954_v24 }
 0x9fa   :  { %1475 = vmatmul.mubr.msk.bf16.vlgmr.msra.gmra.mrb[24].mxu0 %vm270_vm4, %v956_v25  ;;  %v1340_v25 = vld [vmem:[%s1930_s6] ss:$0 sm:$0xff]  ;;  %s1636_s6 = smov [#allocation5]  }
 0x9fb   :  { %1492 = vmatprep.mubr.msk.bf16.mxu0 %vm1628_vm1, %v1627_v12  ;;  %1485 = vmatpush3.bf16.msra.mxu0 %v1523_v55 }
 0x9fc   :  { %1486 = vmatprep.subr.bf16.mxu0 %v1627_v12 }
 0x9ff   :  { %1487 = vmatpush3.bf16.msra.mxu0 %v1524_v19 }
 0xa00   :  { %1488 = vmatprep.subr.bf16.mxu0 %v1627_v12 }
 0xa03   :  { %1489 = vmatpush3.bf16.msra.mxu0 %v1525_v56 }
 0xa04   :  { %1490 = vmatprep.subr.bf16.mxu0 %v1627_v12  ;;  %v1338_v12 = vld [vmem:[%s1927_s3] ss:$0 sm:$0xff] }
 0xa07   :  { %1491 = vmatpush3.bf16.msra.mxu0 %v1526_v57 }
 0xa1f   :  { %v951_v62 = vpop.xlane.xlu1 %950 }
 0xa20   :  { %1557 = vrcp.f32 %v951_v62 }
 0xa23   :  { %v1007_v60 = vpop.permute.xlu1 %1006 }
 0xa24   :  { %v1012_v27 = vsel %vm298_vm3, %v1007_v60, 0 }
 0xa25   :  { %1479 = vmatpush3.bf16.msra.mxu1 %v1012_v27 }
 0xa27   :  { %v1057_v39 = vpop.permute.xlu1 %1056 }
 0xa28   :  { %v1078_v41 = vsel %vm173_vm2, %v1767_v13, %v1057_v39 }
 0xa2a   :  { %v1558_v28 = vpop.eup %1557 }
 0xa2b   :  { %v955_v29 = vmul.f32 %v1558_v28, %v1554_v18  ;;  %v1065_v40 = vpop.permute.xlu1 %1064 }
 0xa2c   :  { %v1081_v26 = vsel %vm1080_vm6, %v1078_v41, %v1065_v40 }
 0xa2d   :  { %v957_v30 = vpack.c.bf16 %v955_v29, %v955_v29 }
 0xa2f   :  { %1481 = vmatmul.mubr.msk.bf16.vlgmr.msra.gmra.mrb[36].mxu1 %vm270_vm4, %v957_v30 }
 0xacd   :  { %v1000_v22 = vpop.f32.mrb[24].mxu0 }
 0xace   :  { %1072 = vrot.lane.b32.xlu1 %v1000_v22, %s1630_s2  ;;  %v1476_v31 = vpop.f32.mrb[25].mxu0  ;;  %v1346_v22 = vld [vmem:[%s1931_s7] ss:$0 sm:$0xff]  ;;  %s1299_s7 = sshll.u32 %s1636_s6, 4  ;;  %s1300_s7 = int_to_ptr.vmem [resolvable:$true] %s1299_s7 }
 0xacf   :  { %v1003_v33 = vpop.f32.mrb[26].mxu0  ;;  %s1597_s18 = scalar_lea.vmem %s1300_s7, 32  ;;  %p1602_p9 = scmp.lt.s32.totalorder %s1300_s7, %s1300_s7 }
 0xad0   :  { %v1477_v34 = vpop.f32.mrb[27].mxu0  ;;  %p1598_p8 = scmp.ne.s32.totalorder %s1300_s7, %s1597_s18  ;;  %p1603_p10 = scmp.lt.s32.totalorder %s1597_s18, %s1597_s18 }
 0xad2   :  { %p1604_p11 = por %p1603_p10, %p1602_p9 }
 0xad4   :  { %p1605_p12 = pnand %p1604_p11, %p1598_p8 }
 0xb02   :  { %v1048_v35 = vpop.f32.mrb[36].mxu1 }
 0xb03   :  { %1074 = vrot.lane.b32.xlu0 %v1048_v35, %s1630_s2  ;;  %v1482_v36 = vpop.f32.mrb[37].mxu1 }
 0xb04   :  { %v1051_v37 = vpop.f32.mrb[38].mxu1 }
 0xb05   :  { %v1483_v38 = vpop.f32.mrb[39].mxu1 }
 0xb40   :  { %v1073_v42 = vpop.permute.xlu1 %1072 }
 0xb41   :  { %v1084_v43 = vsel %vm1083_vm5, %v1081_v26, %v1073_v42 }
 0xb42   :  { %v1086_v44 = vsel %vm112_vm0, %v1084_v43, 0.0  ;;  %v1095_v13 = vmul.f32 %v1084_v43, %v1084_v43 }
 0xb43   :  { %1087 = vadd.xlane.f32.xlu1 %v1086_v44 }
 0xb44   :  { %v1097_v54 = vsel %vm112_vm0, %v1095_v13, 0.0 }
 0xb75   :  { %v1075_v49 = vpop.permute.xlu0 %1074 }
 0xb76   :  { %v1085_v50 = vsel %vm1083_vm5, %v1082_v48, %v1075_v49 }
 0xb77   :  { %v1089_v51 = vsel %vm112_vm0, %v1085_v50, 0.0  ;;  %v1096_v52 = vmul.f32 %v1085_v50, %v1085_v50 }
 0xb78   :  { %1090 = vadd.xlane.f32.xlu0 %v1089_v51 }
 0xb79   :  { %v1100_v53 = vsel %vm112_vm0, %v1096_v52, 0.0 }
 0xb7a   :  { %1101 = vadd.xlane.f32.xlu1 %v1100_v53 }
 0xb7c   :  { %1098 = vadd.xlane.f32.xlu0 %v1097_v54 }
 0xbd0   :  { %v1088_v58 = vpop.xlane.xlu1 %1087 }
 0xbd1   :  { %v1093_v61 = vmul.f32 0.015625, %v1088_v58 }
 0xbd3   :  { %v1105_v4 = vmul.f32 %v1093_v61, %v1093_v61  ;;  %v1109_v15 = vsub.f32 %v1084_v43, %v1093_v61 }
 0xc05   :  { %v1091_v59 = vpop.xlane.xlu0 %1090 }
 0xc06   :  { %v1094_v63 = vmul.f32 0.015625, %v1091_v59 }
 0xc07   :  { %v1102_v0 = vpop.xlane.xlu1 %1101 }
 0xc08   :  { %v1106_v1 = vmul.f32 %v1094_v63, %v1094_v63  ;;  %v1104_v2 = vmul.f32 0.015625, %v1102_v0  ;;  %v1110_v11 = vsub.f32 %v1085_v50, %v1094_v63 }
 0xc09   :  { %v1099_v3 = vpop.xlane.xlu0 %1098 }
 0xc0a   :  { %v1108_v6 = vsub.f32 %v1104_v2, %v1106_v1  ;;  %v1103_v7 = vmul.f32 0.015625, %v1099_v3 }
 0xc0c   :  { %v1112_v8 = vadd.f32 1e-05, %v1108_v6  ;;  %v1107_v9 = vsub.f32 %v1103_v7, %v1105_v4 }
 0xc0e   :  { %1559 = vrsqrt.f32 %v1112_v8  ;;  %v1111_v10 = vadd.f32 1e-05, %v1107_v9 }
 0xc10   :  { %1561 = vrsqrt.f32 %v1111_v10 }
 0xc18   :  { %v1560_v14 = vpop.eup %1559 }
 0xc19   :  { %v1116_v16 = vmul.f32 %v1560_v14, %v1110_v11 }
 0xc1a   :  { %v1562_v17 = vpop.eup %1561 }
 0xc1b   :  { %v1115_v18 = vmul.f32 %v1562_v17, %v1109_v15  ;;  %v1125_v20 = vmul.f32 %v1338_v12, %v1116_v16 }
 0xc1d   :  { %v1124_v5 = vmul.f32 %v1338_v12, %v1115_v18  ;;  %v1134_v23 = vadd.f32 %v1339_v32, %v1125_v20 }
 0xc1f   :  { %v1133_v21 = vadd.f32 %v1339_v32, %v1124_v5 }
 0xc21   :  { %v1135_v24 = vpack.c.bf16 %v1134_v23, %v1133_v21 }
 0xc23   :  { %1493 = vmatmul.mubr.msk.bf16.vlgmr.msra.gmra.mrb[28].mxu0 %vm112_vm0, %v1135_v24 }
 0xcf6   :  { %v1212_v62 = vpop.f32.mrb[28].mxu0 }
 0xcf7   :  { %v1213_v60 = vadd.f32 %v1340_v25, %v1212_v62  ;;  %v1494_v27 = vpop.f32.mrb[29].mxu0 }
 0xcf8   :  { %v1215_v28 = vpop.f32.mrb[30].mxu0 }
 0xcf9   :  { %1563 = vtanh.f32 %v1213_v60  ;;  %v1216_v29 = vadd.f32 %v1340_v25, %v1215_v28  ;;  %v1495_v30 = vpop.f32.mrb[31].mxu0 }
 0xcfb   :  { %1565 = vtanh.f32 %v1216_v29 }
 0xd03   :  { %v1564_v31 = vpop.eup %1563 }
 0xd04   :  { %v1228_v33 = vmul.f32 %v1564_v31, %v1346_v22 }
 0xd05   :  { %v1566_v34 = vpop.eup %1565 }
 0xd06   :  { %v1230_v35 = vsel %vm1080_vm6, %v1228_v33, 0.0  ;;  %v1229_v36 = vmul.f32 %v1566_v34, %v1346_v22 }
 0xd07   :  { %1231 = vadd.xlane.f32.xlu0 %v1230_v35 }
 0xd08   :  { %v1233_v37 = vsel %vm1080_vm6, %v1229_v36, 0.0 }
 0xd09   :  { %1234 = vadd.xlane.f32.xlu1 %v1233_v37 }
 0xd94   :  { %v1232_v38 = vpop.xlane.xlu0 %1231 }
 0xd95   :  { %v1236_v39 = vrot.slane %v1232_v38, 4 }
 0xd96   :  { %v1235_v40 = vpop.xlane.xlu1 %1234 }
 0xd97   :  { %v1237_v41 = vmax.f32 %v1232_v38, %v1236_v39  ;;  %v1242_v26 = vrot.slane %v1235_v40, 4 }
 0xd99   :  { %v1238_v42 = vrot.slane %v1237_v41, 2  ;;  %v1243_v43 = vmax.f32 %v1235_v40, %v1242_v26 }
 0xd9b   :  { %v1239_v44 = vmax.f32 %v1237_v41, %v1238_v42  ;;  %v1244_v45 = vrot.slane %v1243_v43, 2 }
 0xd9d   :  { %v1240_v46 = vrot.slane %v1239_v44, 1  ;;  %v1245_v47 = vmax.f32 %v1243_v43, %v1244_v45 }
 0xd9f   :  { %v1241_v48 = vmax.f32 %v1239_v44, %v1240_v46  ;;  %v1246_v49 = vrot.slane %v1245_v47, 1 }
 0xda1   :  { %v1248_v50 = vsub.f32 %v1232_v38, %v1241_v48  ;;  %v1247_v51 = vmax.f32 %v1245_v47, %v1246_v49 }
 0xda3   :  { %v1250_v52 = vmul.f32 1.442695, %v1248_v50  ;;  %v1249_v13 = vsub.f32 %v1235_v40, %v1247_v51 }
 0xda5   :  { %1567 = vpow2.f32 %v1250_v52  ;;  %v1252_v53 = vmul.f32 1.442695, %v1249_v13 }
 0xda7   :  { %1569 = vpow2.f32 %v1252_v53 }
 0xdaf   :  { %v1568_v54 = vpop.eup %1567 }
 0xdb0   :  { %v1254_v55 = vrot.slane %v1568_v54, 4 }
 0xdb1   :  { %v1570_v19 = vpop.eup %1569 }
 0xdb2   :  { %v1255_v56 = vadd.f32 %v1568_v54, %v1254_v55  ;;  %v1260_v57 = vrot.slane %v1570_v19, 4 }
 0xdb4   :  { %v1256_v58 = vrot.slane %v1255_v56, 2  ;;  %v1261_v59 = vadd.f32 %v1570_v19, %v1260_v57 }
 0xdb6   :  { %v1257_v61 = vadd.f32 %v1256_v58, %v1255_v56  ;;  %v1262_v63 = vrot.slane %v1261_v59, 2 }
 0xdb8   :  { %v1263_v0 = vadd.f32 %v1262_v63, %v1261_v59  ;;  %v1258_v1 = vrot.slane %v1257_v61, 1 }
 0xdba   :  { %v1259_v2 = vadd.f32 %v1258_v1, %v1257_v61  ;;  %v1264_v3 = vrot.slane %v1263_v0, 1 }
 0xdbc   :  { %v1265_v4 = vadd.f32 %v1264_v3, %v1263_v0  ;;  %1571 = vrcp.f32 %v1259_v2 }
 0xdbe   :  { %1573 = vrcp.f32 %v1265_v4 }
 0xdc6   :  { %v1572_v6 = vpop.eup %1571 }
 0xdc7   :  { %v1268_v7 = vmul.f32 %v1572_v6, %v1568_v54 }
 0xdc8   :  { %v1574_v8 = vpop.eup %1573 }
 0xdc9   :  { %v1269_v9 = vmul.f32 %v1574_v8, %v1570_v19  ;;  %v1270_v10 = vmul.f32 %v1268_v7, %v1133_v21 }
 0xdcb   :  { %v1271_v11 = vmul.f32 %v1269_v9, %v1134_v23  ;;  %v1272_v14 = vsel %vm112_vm0, %v1270_v10, 0.0 }
 0xdcc   :  { %v1273_v12 = vrot.slane %v1272_v14, 4 }
 0xdcd   :  { %v1279_v15 = vsel %vm112_vm0, %v1271_v11, 0.0 }
 0xdce   :  { %v1274_v16 = vadd.f32 %v1273_v12, %v1272_v14  ;;  %v1280_v17 = vrot.slane %v1279_v15, 4 }
 0xdd0   :  { %v1275_v18 = vrot.slane %v1274_v16, 2  ;;  %v1281_v20 = vadd.f32 %v1280_v17, %v1279_v15 }
 0xdd2   :  { %v1276_v32 = vadd.f32 %v1275_v18, %v1274_v16  ;;  %v1282_v5 = vrot.slane %v1281_v20, 2 }
 0xdd4   :  { %v1277_v24 = vrot.slane %v1276_v32, 1  ;;  %v1283_v25 = vadd.f32 %v1282_v5, %v1281_v20 }
 0xdd6   :  { %v1284_v62 = vrot.slane %v1283_v25, 1  ;;  %v1278_v60 = vadd.f32 %v1277_v24, %v1276_v32 }
 0xdd8   :  { %v1285_v21 = vadd.f32 %v1284_v62, %v1283_v25 }
 0xdda   :  { %v1289_v23 = vsel %vm1288_vm7, %v1285_v21, %v1278_v60 }
 0xddb   :  { %1292 = vst.msk [vmem:[#allocation5] sm:$0x3] %vm1291_vm8, %v1289_v23 }
 0xddc   :  { %1608 = shalt.err (!%p1605_p12)
}
 0xddd   :  { %s1609_s20 = scalar_lea.hbm %s1932_s8, 32 }
 0xdde   :  { %p1610_p13 = scmp.ne.s32.totalorder %s1932_s8, %s1609_s20  ;;  %p1613_p0 = scmp.lt.u32.totalorder %s1609_s20, %s1932_s8 }
 0xde0   :  { %p1615_p1 = pnand %p1613_p0, %p1610_p13 }
 0xde2   :  { %1618 = shalt.err (!%p1615_p1)
}
 0xde3   :  { %1302 = dma.vmem_to_hbm [thread:$0]  %s1300_s7, 32, %s1932_s8, [#allocation4]  }
 0xde4   :  { %1621 = dma.done.wait [#allocation4], 32  }
 0xde5   :  { %1622 = vsyncadd [#allocation4], 4294967264 }
 0xde6   :  { %1306 = vsyncpa [#allocation3], 1 }
 0xde7   :  { %1307 = vsyncpa [#allocation4], 1 }

</bundles_post_ra>
